<compile_context>
chip_gen: v7x
topology: tpu7x:2x2x1
jax: 0.10.0
libtpu: 0.0.40
codegen_flags: <defaults>
</compile_context>

<pallas_src>
import jax
import jax.numpy as jnp
from jax.experimental import pallas as pl
from jax.experimental.pallas import tpu as pltpu


def sds_guidance_kernel(params_ref, latents_ref, noise_ref,
                        eps_uncond_ref, eps_text_ref,
                        lmi_ref, grad_ref):
    # Scalar-prefetched SMEM params (constant across the grid).
    sqrt_a   = params_ref[0]   # sqrt(alphas_cumprod[t])
    sqrt_1ma = params_ref[1]   # sqrt(1 - alphas_cumprod[t])
    w        = params_ref[2]   # 1 - alphas_cumprod[t]
    gs       = params_ref[3]   # guidance_scale
    clip     = params_ref[4]   # grad_clip (+inf == None in the PyTorch module)

    f32 = jnp.float32
    lat = latents_ref[...].astype(f32)
    nz  = noise_ref[...].astype(f32)

    # scheduler.add_noise (DDPM/DDIM forward process)
    noisy = (sqrt_a * lat + sqrt_1ma * nz).astype(lmi_ref.dtype)
    # fused torch.cat([latents_noisy] * 2): store the tile into both halves.
    lmi_ref[0] = noisy
    lmi_ref[1] = noisy

    # classifier-free guidance:  text + gs * (text - uncond)
    eps_t = eps_text_ref[...].astype(f32)
    eps_u = eps_uncond_ref[...].astype(f32)
    eps   = eps_t + gs * (eps_t - eps_u)

    # w * (noise_pred - noise); clamp (NaN propagates, like torch.clamp); nan_to_num
    g = w * (eps - nz)
    g = jnp.clip(g, -clip, clip)
    g = jnp.where(jnp.isnan(g), f32(0.0), g)                   # nan -> 0
    # +/-inf -> finite max of the grad I/O dtype. NOTE: matches torch.nan_to_num
    # exactly for f32 I/O; for bf16 I/O the saturation value is bf16's max
    # (the torch module also computes grad in the latents dtype).
    fmax = f32(jnp.finfo(grad_ref.dtype).max)
    g = jnp.clip(g, -fmax, fmax)
    grad_ref[...] = g.astype(grad_ref.dtype)


def _auto_tile_and_vmem_limit():
    """Generation-aware tile byte target and explicit scoped-VMEM limit."""
    vmem_phys = 64 << 20   # conservative default (v7x has the smallest VMEM)
    try:
        info = pltpu.get_tpu_info()
        vmem_phys = int(getattr(info, "vmem_capacity_bytes", vmem_phys))
    except Exception:
        pass
    # Pipeline footprint per step ~= 14 tiles:
    #   4 inputs x 2 buffers + grad x 2 buffers + (2x-sized lmi) x 2 buffers.
    budget = min(48 << 20, int(vmem_phys * 0.6))
    tile = min(2 << 20, max(512 << 10, budget // 14))
    return tile, budget


def _slab_layout(n_elems, itemsize, target_tile_bytes):
    """Pick a lane-dense (rows, lanes) slab and an exact-divisor tile row count."""
    lanes = None
    # Largest lane width (multiple of 128) that divides N while keeping >= 8 rows.
    for cand in (2048, 1024, 512, 256, 128):
        if n_elems % cand == 0 and n_elems // cand >= 8:
            lanes = cand
            break
    if lanes is None:
        for cand in (1024, 512, 256, 128):
            if n_elems % cand == 0:
                lanes = cand
                break
    if lanes is None:
        # TODO(synk): pad ragged element counts that are not a multiple of 128.
        raise ValueError("total element count must be a multiple of 128")
    rows = n_elems // lanes

    # Sublane packing multiple: 8 for f32, 16 for bf16, 32 for int8/fp8.
    pack = max(1, 4 // max(1, itemsize))
    row_mult = 8 * pack

    # Target rows per tile from the VMEM budget (>= one packed sublane group).
    target_rows = max(row_mult, target_tile_bytes // (lanes * itemsize))
    # Ensure >= 2 grid steps when the problem is big enough, so both of v7x's
    # TensorCores get work (near-zero cost on single-TC v5e/v6e).
    if rows // 2 >= row_mult:
        target_rows = min(target_rows, rows // 2)

    if rows % row_mult == 0:
        # Largest divisor of rows that is a multiple of row_mult and <= target_rows:
        # every block is full -> dense unmasked stores, no padded epilogue DMA.
        best = row_mult
        limit = min(rows, target_rows)
        d = row_mult
        while d <= limit:
            if rows % d == 0:
                best = d
            d += row_mult
        tile_rows = best
    else:
        # Ragged row count: full extent (always a legal block) when small enough,
        # otherwise a multiple-of-row_mult tile with a masked (but correct) last block.
        if rows * lanes * itemsize <= 2 * target_tile_bytes:
            tile_rows = rows
        else:
            tile_rows = max(row_mult, (target_rows // row_mult) * row_mult)
    return rows, lanes, tile_rows


def sds_train_step(latents, noise, eps_uncond, eps_text,
                   alphas_cumprod, t, guidance_scale=100.0, grad_clip=None,
                   target_tile_bytes=None):
    """Pallas implementation of the non-network math of StableDiffusion.train_step.

    Returns (loss, grad, latent_model_input) where latent_model_input is the
    fused torch.cat([latents_noisy] * 2) result that would feed the UNet.
    """
    B, C, H, W = latents.shape
    io_dtype = latents.dtype
    itemsize = jnp.dtype(io_dtype).itemsize
    n = B * C * H * W

    auto_tile, vmem_limit = _auto_tile_and_vmem_limit()
    if target_tile_bytes is None:
        target_tile_bytes = auto_tile

    rows, lanes, tr = _slab_layout(n, itemsize, target_tile_bytes)
    grid = pl.cdiv(rows, tr)

    a_t = alphas_cumprod[t].astype(jnp.float32)
    clip_val = (jnp.float32(jnp.inf) if grad_clip is None
                else jnp.float32(grad_clip))
    params = jnp.stack([jnp.sqrt(a_t),
                        jnp.sqrt(1.0 - a_t),
                        1.0 - a_t,
                        jnp.asarray(guidance_scale, jnp.float32),
                        clip_val]).astype(jnp.float32)

    # Free, dtype-preserving reshape (contiguous) -> no extra HBM copies.
    slab = lambda x: x.reshape(rows, lanes)

    # Pure HBM streaming: 4n read + 3n written (grad + duplicated lmi halves).
    cost = pl.CostEstimate(flops=12 * n, transcendentals=0,
                           bytes_accessed=7 * n * itemsize)

    # index_maps receive the scalar-prefetch ref as a trailing positional arg.
    tile_spec = pl.BlockSpec((tr, lanes), lambda i, p: (i, 0))
    lmi_spec = pl.BlockSpec((2, tr, lanes), lambda i, p: (0, i, 0))

    lmi, grad = pl.pallas_call(
        sds_guidance_kernel,
        out_shape=(jax.ShapeDtypeStruct((2, rows, lanes), io_dtype),
                   jax.ShapeDtypeStruct((rows, lanes), io_dtype)),
        grid_spec=pltpu.PrefetchScalarGridSpec(
            num_scalar_prefetch=1,
            grid=(grid,),
            in_specs=[tile_spec, tile_spec, tile_spec, tile_spec],
            out_specs=(lmi_spec, tile_spec)),
        compiler_params=pltpu.CompilerParams(
            dimension_semantics=("parallel",),
            vmem_limit_bytes=int(vmem_limit)),
        cost_estimate=cost,
    )(params, slab(latents), slab(noise), slab(eps_uncond), slab(eps_text))

    latent_model_input = lmi.reshape(2 * B, C, H, W)
    grad = grad.reshape(B, C, H, W)
    loss = jnp.ones((1,), dtype=io_dtype)      # SpecifyGradient.forward
    return loss, grad, latent_model_input


def _reference(latents, noise, eps_uncond, eps_text, alphas_cumprod, t,
               guidance_scale, grad_clip):
    a_t = alphas_cumprod[t]
    noisy = jnp.sqrt(a_t) * latents + jnp.sqrt(1.0 - a_t) * noise
    lmi = jnp.concatenate([noisy] * 2, axis=0)
    eps = eps_text + guidance_scale * (eps_text - eps_uncond)
    grad = (1.0 - a_t) * (eps - noise)
    if grad_clip is not None:
        grad = jnp.clip(grad, -grad_clip, grad_clip)
    grad = jnp.nan_to_num(grad)
    return grad, lmi


if __name__ == "__main__":
    key = jax.random.PRNGKey(0)

    # DDIM scheduler alphas_cumprod: scaled_linear betas, 1000 train timesteps
    num_train_timesteps = 1000
    betas = jnp.linspace(0.00085 ** 0.5, 0.012 ** 0.5,
                         num_train_timesteps, dtype=jnp.float32) ** 2
    alphas_cumprod = jnp.cumprod(1.0 - betas)
    t_range = [0.02, 0.98]
    min_step = int(num_train_timesteps * t_range[0])
    max_step = int(num_train_timesteps * t_range[1])

    # ---- case 1: small latent shapes, grad_clip=None ----
    B, C, H, W = 2, 4, 16, 16
    k1, k2, k3, k4, k5 = jax.random.split(key, 5)
    latents = jax.random.normal(k1, (B, C, H, W), jnp.float32)
    noise = jax.random.normal(k2, (B, C, H, W), jnp.float32)
    # TODO(synk): real eps predictions come from pipe.unet(latent_model_input, t, text_emb);
    # the pretrained UNet has no Pallas equivalent here, so use synthetic predictions.
    eps_uncond = jax.random.normal(k3, (B, C, H, W), jnp.float32)
    eps_text = jax.random.normal(k4, (B, C, H, W), jnp.float32)
    t = int(jax.random.randint(k5, (1,), min_step, max_step + 1)[0])
    gs = 100.0

    loss, grad, lmi = sds_train_step(latents, noise, eps_uncond, eps_text,
                                     alphas_cumprod, t, guidance_scale=gs,
                                     grad_clip=None)
    jax.block_until_ready((loss, grad, lmi))

    grad_ref, lmi_ref = _reference(latents, noise, eps_uncond, eps_text,
                                   alphas_cumprod, t, gs, None)
    assert loss.shape == (1,) and float(loss[0]) == 1.0
    assert jnp.allclose(grad, grad_ref, atol=1e-4, rtol=1e-4)
    assert jnp.allclose(lmi, lmi_ref, atol=1e-5, rtol=1e-5)

    # ---- case 2: real SD latent size (B,4,64,64), grid > 1, grad_clip + NaN ----
    B2, C2, H2, W2 = 2, 4, 64, 64
    j1, j2, j3, j4, j5 = jax.random.split(jax.random.PRNGKey(1), 5)
    latents2 = jax.random.normal(j1, (B2, C2, H2, W2), jnp.float32)
    noise2 = jax.random.normal(j2, (B2, C2, H2, W2), jnp.float32)
    eps_uncond2 = jax.random.normal(j3, (B2, C2, H2, W2), jnp.float32)
    eps_text2 = jax.random.normal(j4, (B2, C2, H2, W2), jnp.float32)
    eps_text2 = eps_text2.at[0, 0, 0, 0].set(jnp.nan)   # exercise nan_to_num path
    t2 = int(jax.random.randint(j5, (1,), min_step, max_step + 1)[0])
    gc = 1.0

    loss2, grad2, lmi2 = sds_train_step(latents2, noise2, eps_uncond2, eps_text2,
                                        alphas_cumprod, t2, guidance_scale=gs,
                                        grad_clip=gc,
                                        target_tile_bytes=32 * 1024)  # force grid > 1
    jax.block_until_ready((loss2, grad2, lmi2))

    grad2_ref, lmi2_ref = _reference(latents2, noise2, eps_uncond2, eps_text2,
                                     alphas_cumprod, t2, gs, gc)
    assert loss2.shape == (1,) and float(loss2[0]) == 1.0
    assert jnp.allclose(grad2, grad2_ref, atol=1e-4, rtol=1e-4)
    assert jnp.allclose(lmi2, lmi2_ref, atol=1e-5, rtol=1e-5)

    # ---- case 3: default (auto) tile sizing on the real SD latent shape ----
    loss3, grad3, lmi3 = sds_train_step(latents2, noise2, eps_uncond2, eps_text2,
                                        alphas_cumprod, t2, guidance_scale=gs,
                                        grad_clip=gc)
    jax.block_until_ready((loss3, grad3, lmi3))
    assert jnp.allclose(grad3, grad2_ref, atol=1e-4, rtol=1e-4)
    assert jnp.allclose(lmi3, lmi2_ref, atol=1e-5, rtol=1e-5)

    print("KERNEL_OK")
</pallas_src>

<mosaic_0001>
module attributes {stable_mosaic.version = 11 : i64} {
  func.func @sds_guidance_kernel(%arg0: i32, %arg1: memref<5xf32, #tpu.memory_space<smem>>, %arg2: memref<8x256xf32, #tpu.memory_space<vmem>>, %arg3: memref<8x256xf32, #tpu.memory_space<vmem>>, %arg4: memref<8x256xf32, #tpu.memory_space<vmem>>, %arg5: memref<8x256xf32, #tpu.memory_space<vmem>>, %arg6: memref<2x8x256xf32, #tpu.memory_space<vmem>>, %arg7: memref<8x256xf32, #tpu.memory_space<vmem>>) attributes {dimension_semantics = [#tpu.dimension_semantics<parallel>], iteration_bounds = array<i64: 1>, scalar_prefetch = 1 : i64, scratch_operands = 0 : i64, tpu.core_type = #tpu.core_type<tc>, window_params = [{transform_indices = @transform_0, window_bounds = array<i64: 8, 256>}, {transform_indices = @transform_1, window_bounds = array<i64: 8, 256>}, {transform_indices = @transform_2, window_bounds = array<i64: 8, 256>}, {transform_indices = @transform_3, window_bounds = array<i64: 8, 256>}, {transform_indices = @transform_4, window_bounds = array<i64: 2, 8, 256>}, {transform_indices = @transform_5, window_bounds = array<i64: 8, 256>}]} {
    %c0 = arith.constant 0 : index
    %0 = memref.load %arg1[%c0] : memref<5xf32, #tpu.memory_space<smem>>
    %c1 = arith.constant 1 : index
    %1 = memref.load %arg1[%c1] : memref<5xf32, #tpu.memory_space<smem>>
    %c2 = arith.constant 2 : index
    %2 = memref.load %arg1[%c2] : memref<5xf32, #tpu.memory_space<smem>>
    %c3 = arith.constant 3 : index
    %3 = memref.load %arg1[%c3] : memref<5xf32, #tpu.memory_space<smem>>
    %c4 = arith.constant 4 : index
    %4 = memref.load %arg1[%c4] : memref<5xf32, #tpu.memory_space<smem>>
    %c0_0 = arith.constant 0 : index
    %c0_1 = arith.constant 0 : index
    %5 = vector.load %arg2[%c0_0, %c0_1] : memref<8x256xf32, #tpu.memory_space<vmem>>, vector<8x256xf32>
    %c0_2 = arith.constant 0 : index
    %c0_3 = arith.constant 0 : index
    %6 = vector.load %arg3[%c0_2, %c0_3] : memref<8x256xf32, #tpu.memory_space<vmem>>, vector<8x256xf32>
    %7 = vector.broadcast %0 : f32 to vector<8x256xf32>
    %8 = arith.mulf %7, %5 : vector<8x256xf32>
    %9 = vector.broadcast %1 : f32 to vector<8x256xf32>
    %10 = arith.mulf %9, %6 : vector<8x256xf32>
    %11 = arith.addf %8, %10 : vector<8x256xf32>
    %c0_4 = arith.constant 0 : index
    %c0_5 = arith.constant 0 : index
    %c0_6 = arith.constant 0 : index
    %12 = vector.load %arg6[%c0_4, %c0_5, %c0_6] : memref<2x8x256xf32, #tpu.memory_space<vmem>>, vector<1x8x256xf32>
    %13 = vector.shape_cast %12 : vector<1x8x256xf32> to vector<8x256xf32>
    %14 = vector.shape_cast %11 : vector<8x256xf32> to vector<1x8x256xf32>
    tpu.vector_store %arg6[%c0_4, %c0_5, %c0_6], %14 {strides = array<i32>} : memref<2x8x256xf32, #tpu.memory_space<vmem>>, vector<1x8x256xf32>,
    %c1_7 = arith.constant 1 : index
    %c0_8 = arith.constant 0 : index
    %c0_9 = arith.constant 0 : index
    %15 = vector.load %arg6[%c1_7, %c0_8, %c0_9] : memref<2x8x256xf32, #tpu.memory_space<vmem>>, vector<1x8x256xf32>
    %16 = vector.shape_cast %15 : vector<1x8x256xf32> to vector<8x256xf32>
    %17 = vector.shape_cast %11 : vector<8x256xf32> to vector<1x8x256xf32>
    tpu.vector_store %arg6[%c1_7, %c0_8, %c0_9], %17 {strides = array<i32>} : memref<2x8x256xf32, #tpu.memory_space<vmem>>, vector<1x8x256xf32>,
    %c0_10 = arith.constant 0 : index
    %c0_11 = arith.constant 0 : index
    %18 = vector.load %arg5[%c0_10, %c0_11] : memref<8x256xf32, #tpu.memory_space<vmem>>, vector<8x256xf32>
    %c0_12 = arith.constant 0 : index
    %c0_13 = arith.constant 0 : index
    %19 = vector.load %arg4[%c0_12, %c0_13] : memref<8x256xf32, #tpu.memory_space<vmem>>, vector<8x256xf32>
    %20 = arith.subf %18, %19 : vector<8x256xf32>
    %21 = vector.broadcast %3 : f32 to vector<8x256xf32>
    %22 = arith.mulf %21, %20 : vector<8x256xf32>
    %23 = arith.addf %18, %22 : vector<8x256xf32>
    %24 = arith.subf %23, %6 : vector<8x256xf32>
    %25 = vector.broadcast %2 : f32 to vector<8x256xf32>
    %26 = arith.mulf %25, %24 : vector<8x256xf32>
    %cst = arith.constant 0.000000e+00 : f32
    %27 = arith.subf %cst, %4 : f32
    %28 = vector.broadcast %27 : f32 to vector<8x256xf32>
    %29 = arith.maximumf %28, %26 : vector<8x256xf32>
    %30 = vector.broadcast %4 : f32 to vector<8x256xf32>
    %31 = arith.minimumf %30, %29 : vector<8x256xf32>
    %32 = arith.cmpf one, %31, %31 : vector<8x256xf32>
    %cst_14 = arith.constant 0.000000e+00 : f32
    %33 = vector.broadcast %cst_14 : f32 to vector<8x256xf32>
    %34 = arith.select %32, %33, %31 : vector<8x256xi1>, vector<8x256xf32>
    %cst_15 = arith.constant 0.000000e+00 : f32
    %cst_16 = arith.constant 3.40282347E+38 : f32
    %35 = arith.subf %cst_15, %cst_16 : f32
    %cst_17 = arith.constant 3.40282347E+38 : f32
    %36 = vector.broadcast %35 : f32 to vector<8x256xf32>
    %37 = arith.maximumf %36, %34 : vector<8x256xf32>
    %38 = vector.broadcast %cst_17 : f32 to vector<8x256xf32>
    %39 = arith.minimumf %38, %37 : vector<8x256xf32>
    %c0_18 = arith.constant 0 : index
    %c0_19 = arith.constant 0 : index
    %40 = vector.load %arg7[%c0_18, %c0_19] : memref<8x256xf32, #tpu.memory_space<vmem>>, vector<8x256xf32>
    tpu.vector_store %arg7[%c0_18, %c0_19], %39 {strides = array<i32>} : memref<8x256xf32, #tpu.memory_space<vmem>>, vector<8x256xf32>,
    return
  }
  func.func @transform_0(%arg0: i32, %arg1: memref<5xf32, #tpu.memory_space<smem>>) -> (i32, i32) {
    %c0_i32 = arith.constant 0 : i32
    %c0_i32_0 = arith.constant 0 : i32
    return %arg0, %c0_i32 : i32, i32
  }
  func.func @transform_1(%arg0: i32, %arg1: memref<5xf32, #tpu.memory_space<smem>>) -> (i32, i32) {
    %c0_i32 = arith.constant 0 : i32
    %c0_i32_0 = arith.constant 0 : i32
    return %arg0, %c0_i32 : i32, i32
  }
  func.func @transform_2(%arg0: i32, %arg1: memref<5xf32, #tpu.memory_space<smem>>) -> (i32, i32) {
    %c0_i32 = arith.constant 0 : i32
    %c0_i32_0 = arith.constant 0 : i32
    return %arg0, %c0_i32 : i32, i32
  }
  func.func @transform_3(%arg0: i32, %arg1: memref<5xf32, #tpu.memory_space<smem>>) -> (i32, i32) {
    %c0_i32 = arith.constant 0 : i32
    %c0_i32_0 = arith.constant 0 : i32
    return %arg0, %c0_i32 : i32, i32
  }
  func.func @transform_4(%arg0: i32, %arg1: memref<5xf32, #tpu.memory_space<smem>>) -> (i32, i32, i32) {
    %c0_i32 = arith.constant 0 : i32
    %c0_i32_0 = arith.constant 0 : i32
    %c0_i32_1 = arith.constant 0 : i32
    return %c0_i32, %arg0, %c0_i32_0 : i32, i32, i32
  }
  func.func @transform_5(%arg0: i32, %arg1: memref<5xf32, #tpu.memory_space<smem>>) -> (i32, i32) {
    %c0_i32 = arith.constant 0 : i32
    %c0_i32_0 = arith.constant 0 : i32
    return %arg0, %c0_i32 : i32, i32
  }
}

</mosaic_0001>

<bundles_post_ra>
// kernel: tpu_custom_call.1
= control target key start
LH: loop header
LB: loop body
LE: loop exit
PB: predicated region body
PF: predicated region fallthrough
CT: control target
= control target key end

     0   :  { %s465_s0 = inlined_call_operand.hbm [shape: f32[5], index: 0, kind: input, shape index: {}]   ;;  %s466_s1 = inlined_call_operand.hbm [shape: f32[8,256], index: 1, kind: input, shape index: {}]   ;;  %s467_s2 = inlined_call_operand.hbm [shape: f32[8,256], index: 2, kind: input, shape index: {}]   ;;  %s468_s3 = inlined_call_operand.hbm [shape: f32[8,256], index: 3, kind: input, shape index: {}]   ;;  %s469_s4 = inlined_call_operand.hbm [shape: f32[8,256], index: 4, kind: input, shape index: {}]   ;;  %s470_s5 = inlined_call_operand.hbm [shape: f32[2,8,256], index: 5, kind: output, shape index: {0}]   ;;  %s471_s6 = inlined_call_operand.hbm [shape: f32[8,256], index: 6, kind: output, shape index: {1}]  }
   0x1   :  { %s176_s23 = scalar_lea.hbm %s465_s0, 16 }
   0x2   :  { %p177_p0 = scmp.ne.s32.totalorder %s465_s0, %s176_s23  ;;  %p180_p1 = scmp.lt.u32.totalorder %s176_s23, %s465_s0 }
   0x4   :  { %p182_p2 = pnand %p180_p1, %p177_p0 }
   0x6   :  { %185 = shalt.err (!%p182_p2)  }
   0x7   :  { %s330_s28 = smov [#allocation3]  }
   0x8   :  { %13 = dma.hbm_to_smem %s465_s0, 16, %s330_s28, [#allocation2] }
   0x9   :  { %318 = dma.done.wait [#allocation2], 16 }
   0xa   :  { %319 = vsyncadd [#allocation2], 4294967280 }
   0xb   :  { %15 = sfence }
   0xc   :  { %16 = vsyncpa [#allocation5], 0 }
   0xd   :  { %17 = vsyncpa [#allocation8], 0 }
   0xe   :  { %18 = vsyncpa [#allocation11], 0 }
   0xf   :  { %19 = vsyncpa [#allocation6], 0 }
  0x10   :  { %20 = vsyncpa [#allocation14], 0  ;;  %s331_s7 = smov [#allocation7]   ;;  %s332_s9 = smov [#allocation4]  }
  0x11   :  { %s37_s8 = sshll.u32 %s331_s7, 4  ;;  %s27_s10 = sshll.u32 %s332_s9, 4  ;;  %s38_s8 = int_to_ptr.vmem [resolvable:$true] %s37_s8  ;;  %s28_s10 = int_to_ptr.vmem [resolvable:$true] %s27_s10 }
  0x12   :  { %s186_s13 = scalar_lea.hbm %s467_s2, 256 }
  0x13   :  { %p187_p3 = scmp.ne.s32.totalorder %s467_s2, %s186_s13  ;;  %p190_p4 = scmp.lt.u32.totalorder %s186_s13, %s467_s2 }
  0x15   :  { %p192_p5 = pnand %p190_p4, %p187_p3 }
  0x17   :  { %195 = shalt.err (!%p192_p5)
}
  0x18   :  { %s196_s17 = scalar_lea.vmem %s38_s8, 256  ;;  %p201_p7 = scmp.lt.s32.totalorder %s38_s8, %s38_s8 }
  0x19   :  { %p197_p6 = scmp.ne.s32.totalorder %s38_s8, %s196_s17  ;;  %p202_p8 = scmp.lt.s32.totalorder %s196_s17, %s196_s17 }
  0x1b   :  { %p203_p9 = por %p202_p8, %p201_p7 }
  0x1d   :  { %p204_p10 = pnand %p203_p9, %p197_p6 }
  0x1f   :  { %207 = shalt.err (!%p204_p10)
}
  0x20   :  { %40 = dma.hbm_to_vmem [thread:$0]  %s467_s2, 256, %s38_s8, [#allocation8]  }
  0x21   :  { %s208_s22 = scalar_lea.hbm %s466_s1, 256 }
  0x22   :  { %p209_p11 = scmp.ne.s32.totalorder %s466_s1, %s208_s22  ;;  %p212_p12 = scmp.lt.u32.totalorder %s208_s22, %s466_s1 }
  0x24   :  { %p214_p13 = pnand %p212_p12, %p209_p11 }
  0x26   :  { %217 = shalt.err (!%p214_p13)
}
  0x27   :  { %s218_s27 = scalar_lea.vmem %s28_s10, 256  ;;  %p223_p1 = scmp.lt.s32.totalorder %s28_s10, %s28_s10 }
  0x28   :  { %p219_p0 = scmp.ne.s32.totalorder %s28_s10, %s218_s27  ;;  %p224_p2 = scmp.lt.s32.totalorder %s218_s27, %s218_s27 }
  0x2a   :  { %p225_p3 = por %p224_p2, %p223_p1 }
  0x2c   :  { %p226_p4 = pnand %p225_p3, %p219_p0 }
  0x2e   :  { %229 = shalt.err (!%p226_p4)
}
  0x2f   :  { %30 = dma.hbm_to_vmem [thread:$0]  %s466_s1, 256, %s28_s10, [#allocation5]  }
  0x30   :  { %s333_s29 = smov [#allocation9]   ;;  %s334_s7 = smov [#allocation10]  }
  0x31   :  { %s47_s30 = sshll.u32 %s333_s29, 4  ;;  %s57_s8 = sshll.u32 %s334_s7, 4  ;;  %s48_s30 = int_to_ptr.vmem [resolvable:$true] %s47_s30  ;;  %s58_s8 = int_to_ptr.vmem [resolvable:$true] %s57_s8 }
  0x32   :  { %s230_s12 = scalar_lea.hbm %s468_s3, 256 }
  0x33   :  { %p231_p5 = scmp.ne.s32.totalorder %s468_s3, %s230_s12  ;;  %p234_p6 = scmp.lt.u32.totalorder %s230_s12, %s468_s3 }
  0x35   :  { %p236_p7 = pnand %p234_p6, %p231_p5 }
  0x37   :  { %239 = shalt.err (!%p236_p7)
}
  0x38   :  { %s240_s1 = scalar_lea.vmem %s48_s30, 256  ;;  %p245_p9 = scmp.lt.s32.totalorder %s48_s30, %s48_s30 }
  0x39   :  { %p241_p8 = scmp.ne.s32.totalorder %s48_s30, %s240_s1  ;;  %p246_p10 = scmp.lt.s32.totalorder %s240_s1, %s240_s1 }
  0x3b   :  { %p247_p11 = por %p246_p10, %p245_p9 }
  0x3d   :  { %p248_p12 = pnand %p247_p11, %p241_p8 }
  0x3f   :  { %251 = shalt.err (!%p248_p12)
}
  0x40   :  { %50 = dma.hbm_to_vmem [thread:$0]  %s468_s3, 256, %s48_s30, [#allocation8]  }
  0x41   :  { %s252_s19 = scalar_lea.hbm %s469_s4, 256 }
  0x42   :  { %p253_p13 = scmp.ne.s32.totalorder %s469_s4, %s252_s19  ;;  %p256_p0 = scmp.lt.u32.totalorder %s252_s19, %s469_s4 }
  0x44   :  { %p258_p1 = pnand %p256_p0, %p253_p13 }
  0x46   :  { %261 = shalt.err (!%p258_p1)
}
  0x47   :  { %s262_s24 = scalar_lea.vmem %s58_s8, 256  ;;  %p267_p3 = scmp.lt.s32.totalorder %s58_s8, %s58_s8 }
  0x48   :  { %p263_p2 = scmp.ne.s32.totalorder %s58_s8, %s262_s24  ;;  %p268_p4 = scmp.lt.s32.totalorder %s262_s24, %s262_s24 }
  0x4a   :  { %p269_p5 = por %p268_p4, %p267_p3 }
  0x4c   :  { %p270_p6 = pnand %p269_p5, %p263_p2 }
  0x4e   :  { %273 = shalt.err (!%p270_p6)
}
  0x4f   :  { %60 = dma.hbm_to_vmem [thread:$0]  %s469_s4, 256, %s58_s8, [#allocation11]  }
  0x50   :  { %320 = dma.done.wait [#allocation5], 256  }
  0x51   :  { %321 = vsyncadd [#allocation5], 4294967040 }
  0x52   :  { %322 = dma.done.wait [#allocation8], 512  }
  0x53   :  { %323 = vsyncadd [#allocation8], 4294966784 }
  0x54   :  { %324 = dma.done.wait [#allocation11], 256  }
  0x55   :  { %325 = vsyncadd [#allocation11], 4294967040  ;;  %s73_s26 = sld [smem:[#allocation3]]  ;;  %s161_s27 = sld [smem:[#allocation3 + $0x1]]  ;;  %v78_v0 = vld [vmem:[#allocation4] sm:$0xff]  ;;  %v80_v1 = vld [vmem:[#allocation7] sm:$0xff] }
  0x56   :  { %s163_s2 = sld [smem:[#allocation3 + $0x3]]  ;;  %s434_s28 = sld [smem:[#allocation3 + $0x4]]  ;;  %v95_v4 = vld [vmem:[#allocation10] sm:$0xff]  ;;  %v97_v7 = vld [vmem:[#allocation9] sm:$0xff]  ;;  %v79_v9 = vld [vmem:[#allocation4 + $0x8] sm:$0xff] }
  0x57   :  { %s436_s29 = sld [smem:[#allocation3 + $0x2]]  ;;  %v81_v10 = vld [vmem:[#allocation7 + $0x8] sm:$0xff]  ;;  %s335_s4 = smov [#allocation12]   ;;  %v99_v11 = vsub.f32 %v95_v4, %v97_v7  ;;  %v98_v15 = vld [vmem:[#allocation9 + $0x8] sm:$0xff] }
  0x58   :  { %s133_s30 = sshll.u32 %s335_s4, 4  ;;  %v96_v14 = vld [vmem:[#allocation10 + $0x8] sm:$0xff]  ;;  %s134_s30 = int_to_ptr.vmem [resolvable:$true] %s133_s30 }
  0x59   :  { %v100_v17 = vsub.f32 %v96_v14, %v98_v15  ;;  %s274_s8 = scalar_lea.vmem %s134_s30, 512  ;;  %p279_p8 = scmp.lt.s32.totalorder %s134_s30, %s134_s30 }
  0x5a   :  { %p275_p7 = scmp.ne.s32.totalorder %s134_s30, %s274_s8  ;;  %p280_p9 = scmp.lt.s32.totalorder %s274_s8, %s274_s8 }
  0x5b   :  { %v82_v2 = vstv %s73_s26  ;;  %v85_v3 = vstv %s161_s27 }
  0x5c   :  { %v83_v5 = vmul.f32 %v82_v2, %v78_v0  ;;  %v86_v6 = vmul.f32 %v85_v3, %v80_v1  ;;  %v101_v8 = vstv %s163_s2  ;;  %v84_v12 = vmul.f32 %v82_v2, %v79_v9  ;;  %s111_s7 = ssub.f32 0.0, %s434_s28  ;;  %p281_p10 = por %p280_p9, %p279_p8 }
  0x5d   :  { %v87_v13 = vmul.f32 %v85_v3, %v81_v10  ;;  %v102_v18 = vmul.f32 %v101_v8, %v99_v11  ;;  %v103_v20 = vmul.f32 %v101_v8, %v100_v17  ;;  %v108_v22 = vstv %s436_s29 }
  0x5e   :  { %v88_v16 = vadd.f32 %v86_v6, %v83_v5  ;;  %p282_p11 = pnand %p281_p10, %p275_p7 }
  0x5f   :  { %v89_v19 = vadd.f32 %v87_v13, %v84_v12  ;;  %v104_v21 = vadd.f32 %v102_v18, %v95_v4  ;;  %v105_v23 = vadd.f32 %v103_v20, %v96_v14 }
  0x60   :  { %90 = vst [vmem:[#allocation12] sm:$0xff] %v88_v16  ;;  %93 = vst [vmem:[#allocation12 + $0x10] sm:$0xff] %v88_v16 }
  0x61   :  { %91 = vst [vmem:[#allocation12 + $0x8] sm:$0xff] %v89_v19  ;;  %94 = vst [vmem:[#allocation12 + $0x18] sm:$0xff] %v89_v19 }
  0x62   :  { %285 = shalt.err (!%p282_p11)
}
  0x63   :  { %s286_s12 = scalar_lea.hbm %s470_s5, 512 }
  0x64   :  { %p287_p12 = scmp.ne.s32.totalorder %s470_s5, %s286_s12  ;;  %p290_p13 = scmp.lt.u32.totalorder %s286_s12, %s470_s5 }
  0x66   :  { %p292_p0 = pnand %p290_p13, %p287_p12 }
  0x68   :  { %295 = shalt.err (!%p292_p0)
}
  0x69   :  { %s336_s1 = smov 256   ;;  %s337_s10 = smov 16   ;;  %v106_v24 = vsub.f32 %v104_v21, %v80_v1  ;;  %v107_v25 = vsub.f32 %v105_v23, %v81_v10  ;;  %v112_v26 = vstv %s111_s7  ;;  %v115_v29 = vstv %s434_s28 }
  0x6a   :  { %139 = dma.vmem_to_hbm [thread:$0]  %s134_s30, 512, %s470_s5, [#allocation6], %s336_s1, %s336_s1, %s337_s10  }
  0x6b   :  { %v109_v27 = vmul.f32 %v108_v22, %v106_v24  ;;  %v110_v28 = vmul.f32 %v108_v22, %v107_v25  ;;  %s338_s18 = smov [#allocation13]  }
  0x6c   :  { %s146_s19 = sshll.u32 %s338_s18, 4  ;;  %s147_s19 = int_to_ptr.vmem [resolvable:$true] %s146_s19 }
  0x6d   :  { %v113_v30 = vmax.f32 %v112_v26, %v109_v27  ;;  %v114_v31 = vmax.f32 %v112_v26, %v110_v28  ;;  %s296_s5 = scalar_lea.vmem %s147_s19, 256  ;;  %p301_p2 = scmp.lt.s32.totalorder %s147_s19, %s147_s19 }
  0x6e   :  { %p297_p1 = scmp.ne.s32.totalorder %s147_s19, %s296_s5  ;;  %p302_p3 = scmp.lt.s32.totalorder %s296_s5, %s296_s5 }
  0x6f   :  { %v116_v32 = vmin.f32 %v115_v29, %v113_v30  ;;  %v117_v33 = vmin.f32 %v115_v29, %v114_v31 }
  0x70   :  { %p303_p4 = por %p302_p3, %p301_p2 }
  0x71   :  { %vm118_vm0 = vcmp.ne.f32.partialorder %v116_v32, %v116_v32  ;;  %vm119_vm1 = vcmp.ne.f32.partialorder %v117_v33, %v117_v33 }
  0x72   :  { %v120_v34 = vsel %vm118_vm0, 0.0, %v116_v32  ;;  %v121_v36 = vsel %vm119_vm1, 0.0, %v117_v33  ;;  %p304_p5 = pnand %p303_p4, %p297_p1 }
  0x73   :  { %v165_v35 = vclamps-f32 %v120_v34, 3.4028235e+38  ;;  %v166_v37 = vclamps-f32 %v121_v36, 3.4028235e+38 }
  0x75   :  { %126 = vst [vmem:[#allocation13] sm:$0xff] %v165_v35  ;;  %127 = vst [vmem:[#allocation13 + $0x8] sm:$0xff] %v166_v37 }
  0x76   :  { %307 = shalt.err (!%p304_p5)
}
  0x77   :  { %s308_s22 = scalar_lea.hbm %s471_s6, 256 }
  0x78   :  { %p309_p6 = scmp.ne.s32.totalorder %s471_s6, %s308_s22  ;;  %p312_p7 = scmp.lt.u32.totalorder %s308_s22, %s471_s6 }
  0x7a   :  { %p314_p8 = pnand %p312_p7, %p309_p6 }
  0x7c   :  { %317 = shalt.err (!%p314_p8)
}
  0x7d   :  { %149 = dma.vmem_to_hbm [thread:$0]  %s147_s19, 256, %s471_s6, [#allocation14]  }
  0x7e   :  { %326 = dma.done.wait [#allocation6], 512  }
  0x7f   :  { %327 = vsyncadd [#allocation6], 4294966784 }
  0x80   :  { %328 = dma.done.wait [#allocation14], 256  }
  0x81   :  { %329 = vsyncadd [#allocation14], 4294967040 }
  0x82   :  { %156 = vsyncpa [#allocation5], 1 }
  0x83   :  { %157 = vsyncpa [#allocation8], 1 }
  0x84   :  { %158 = vsyncpa [#allocation11], 1 }
  0x85   :  { %159 = vsyncpa [#allocation6], 1 }
  0x86   :  { %160 = vsyncpa [#allocation14], 1 }

</bundles_post_ra>
